<compile_context>
chip_gen: v5e
topology: v5e:2x2
jax: 0.10.0
libtpu: 0.0.40
codegen_flags: <defaults>
</compile_context>

<pallas_src>
import jax
import jax.numpy as jnp
from jax.experimental import pallas as pl
from jax.experimental.pallas import tpu as pltpu


def _round_up(x, m):
    return ((x + m - 1) // m) * m


def _linear_kernel(x_ref, w_ref, b_ref, o_ref):
    # x_ref: (tm, K) compute_dtype, w_ref: (K, Np) compute_dtype,
    # b_ref: (1, Np) f32, o_ref: (tm, Np) f32
    acc = jnp.dot(x_ref[...], w_ref[...], preferred_element_type=jnp.float32)
    o_ref[...] = (acc + b_ref[...]).astype(o_ref.dtype)


def pt_linear(last_hs, weight, bias, *, tm_max=1024, compute_dtype=jnp.bfloat16):
    """raw_pred = last_hs @ weight + bias via a Pallas TPU kernel.

    last_hs: (B, S, K) float32
    weight:  (K, N)    float32   (already transposed vs. torch's (N, K))
    bias:    (N,)      float32
    returns: (B, S, N) float32
    """
    B, S, K = last_hs.shape
    N = weight.shape[1]
    M = B * S

    # Large row tile (multiple of 8 for sublane alignment); pad M up to it.
    tm = min(tm_max, _round_up(M, 8))
    M_pad = _round_up(M, tm)
    # Lane-dense output: pad N up to a multiple of 128.
    N_pad = _round_up(N, 128)

    x2d = last_hs.reshape(M, K).astype(compute_dtype)
    if M_pad != M:
        x2d = jnp.pad(x2d, ((0, M_pad - M), (0, 0)))

    w = weight.astype(compute_dtype)
    b2d = bias.astype(jnp.float32).reshape(1, N)
    if N_pad != N:
        w = jnp.pad(w, ((0, 0), (0, N_pad - N)))
        b2d = jnp.pad(b2d, ((0, 0), (0, N_pad - N)))

    grid = (M_pad // tm,)

    cost = pl.CostEstimate(
        flops=2 * M_pad * K * N_pad,
        transcendentals=0,
        bytes_accessed=(x2d.size * x2d.dtype.itemsize
                        + w.size * w.dtype.itemsize
                        + b2d.size * b2d.dtype.itemsize
                        + M_pad * N_pad * 4),
    )

    out2d = pl.pallas_call(
        _linear_kernel,
        out_shape=jax.ShapeDtypeStruct((M_pad, N_pad), jnp.float32),
        grid_spec=pltpu.PrefetchScalarGridSpec(
            num_scalar_prefetch=0,
            grid=grid,
            in_specs=[
                pl.BlockSpec((tm, K), lambda i: (i, 0)),       # rows of X
                pl.BlockSpec((K, N_pad), lambda i: (0, 0)),    # full weight, resident
                pl.BlockSpec((1, N_pad), lambda i: (0, 0)),    # bias, resident
            ],
            out_specs=pl.BlockSpec((tm, N_pad), lambda i: (i, 0)),
        ),
        compiler_params=pltpu.CompilerParams(
            dimension_semantics=("parallel",),
        ),
        cost_estimate=cost,
    )(x2d, w, b2d)

    return out2d[:M, :N].reshape(B, S, N)


def pt_forward(item_hidden, weight, bias):
    # TODO(synk): saved_bertkt is an external pretrained encoder with no
    # definition available; `item_hidden` stands in for its output last_hs.
    last_hs = item_hidden
    return pt_linear(last_hs, weight, bias)


if __name__ == "__main__":
    # Small shapes consistent with the module: d_model=128, n_skill=30 -> out 32.
    B, S, D_MODEL, N_SKILL = 2, 8, 128, 30
    N_OUT = N_SKILL + 2

    key = jax.random.PRNGKey(0)
    k_hs, k_w, k_b = jax.random.split(key, 3)

    # Deterministic synthetic "last_hs" (output of saved_bertkt) and Linear params.
    last_hs = jax.random.normal(k_hs, (B, S, D_MODEL), dtype=jnp.float32)
    # torch nn.Linear stores weight as (out, in); kept here as (in, out).
    w = jax.random.normal(k_w, (D_MODEL, N_OUT), dtype=jnp.float32) * (1.0 / D_MODEL ** 0.5)
    b = jax.random.normal(k_b, (N_OUT,), dtype=jnp.float32) * 0.01

    raw_pred = pt_forward(last_hs, w, b)
    raw_pred = jax.block_until_ready(raw_pred)
    assert raw_pred.shape == (B, S, N_OUT)

    # Reference with the same bf16-operand / f32-accumulation math as the kernel.
    ref_bf16 = (jnp.dot(last_hs.astype(jnp.bfloat16), w.astype(jnp.bfloat16),
                        preferred_element_type=jnp.float32) + b)
    assert jnp.allclose(raw_pred, ref_bf16, atol=1e-3, rtol=1e-3)

    # Looser sanity check against the pure-f32 reference (bf16 rounding error).
    ref_f32 = last_hs @ w + b
    assert jnp.allclose(raw_pred, ref_f32, atol=5e-2, rtol=5e-2)

    print("KERNEL_OK")
</pallas_src>

<mosaic_0001>
module attributes {stable_mosaic.version = 11 : i64} {
  func.func @_linear_kernel(%arg0: i32, %arg1: memref<16x128xbf16, #tpu.memory_space<vmem>>, %arg2: memref<128x128xbf16, #tpu.memory_space<vmem>>, %arg3: memref<1x128xf32, #tpu.memory_space<vmem>>, %arg4: memref<16x128xf32, #tpu.memory_space<vmem>>) attributes {dimension_semantics = [#tpu.dimension_semantics<parallel>], iteration_bounds = array<i64: 1>, scalar_prefetch = 0 : i64, scratch_operands = 0 : i64, tpu.core_type = #tpu.core_type<tc>, window_params = [{transform_indices = @transform_0, window_bounds = array<i64: 16, 128>}, {pipeline_mode = #tpu.pipeline_mode<synchronous>, transform_indices = @transform_1, window_bounds = array<i64: 128, 128>}, {pipeline_mode = #tpu.pipeline_mode<synchronous>, transform_indices = @transform_2, window_bounds = array<i64: 1, 128>}, {transform_indices = @transform_3, window_bounds = array<i64: 16, 128>}]} {
    %c0 = arith.constant 0 : index
    %c0_0 = arith.constant 0 : index
    %0 = vector.load %arg1[%c0, %c0_0] : memref<16x128xbf16, #tpu.memory_space<vmem>>, vector<16x128xbf16>
    %c0_1 = arith.constant 0 : index
    %c0_2 = arith.constant 0 : index
    %1 = vector.load %arg2[%c0_1, %c0_2] : memref<128x128xbf16, #tpu.memory_space<vmem>>, vector<128x128xbf16>
    %cst = arith.constant dense<0.000000e+00> : vector<16x128xf32>
    %2 = tpu.matmul %0, %1, %cst {dimension_numbers = #tpu.dot_dimension_numbers<[1], [0], [0], [1], [0, 0, 1, 1], [], []>} : vector<16x128xbf16>, vector<128x128xbf16>, vector<16x128xf32> -> vector<16x128xf32>
    %c0_3 = arith.constant 0 : index
    %c0_4 = arith.constant 0 : index
    %3 = vector.load %arg3[%c0_3, %c0_4] : memref<1x128xf32, #tpu.memory_space<vmem>>, vector<1x128xf32>
    %4 = vector.broadcast %3 : vector<1x128xf32> to vector<16x128xf32>
    %5 = arith.addf %2, %4 : vector<16x128xf32>
    %c0_5 = arith.constant 0 : index
    %c0_6 = arith.constant 0 : index
    %6 = vector.load %arg4[%c0_5, %c0_6] : memref<16x128xf32, #tpu.memory_space<vmem>>, vector<16x128xf32>
    tpu.vector_store %arg4[%c0_5, %c0_6], %5 {strides = array<i32>} : memref<16x128xf32, #tpu.memory_space<vmem>>, vector<16x128xf32>,
    return
  }
  func.func @transform_0(%arg0: i32) -> (i32, i32) {
    %c0_i32 = arith.constant 0 : i32
    %c0_i32_0 = arith.constant 0 : i32
    return %arg0, %c0_i32 : i32, i32
  }
  func.func @transform_1(%arg0: i32) -> (i32, i32) {
    %c0_i32 = arith.constant 0 : i32
    %c0_i32_0 = arith.constant 0 : i32
    %c0_i32_1 = arith.constant 0 : i32
    return %c0_i32, %c0_i32_0 : i32, i32
  }
  func.func @transform_2(%arg0: i32) -> (i32, i32) {
    %c0_i32 = arith.constant 0 : i32
    %c0_i32_0 = arith.constant 0 : i32
    %c0_i32_1 = arith.constant 0 : i32
    return %c0_i32, %c0_i32_0 : i32, i32
  }
  func.func @transform_3(%arg0: i32) -> (i32, i32) {
    %c0_i32 = arith.constant 0 : i32
    %c0_i32_0 = arith.constant 0 : i32
    return %arg0, %c0_i32 : i32, i32
  }
}

</mosaic_0001>

<bundles_post_ra>
// kernel: tpu_custom_call.1
= control target key start
LH: loop header
LB: loop body
LE: loop exit
PB: predicated region body
PF: predicated region fallthrough
CT: control target
= control target key end

     0   :  { %8 = vsyncpa [#allocation3], 0  ;;  %s329_s0 = inlined_call_operand.hbm [shape: bf16[16,128], index: 0, kind: input, shape index: {}]   ;;  %s330_s1 = inlined_call_operand.hbm [shape: bf16[128,128], index: 1, kind: input, shape index: {}]   ;;  %s331_s2 = inlined_call_operand.vmem [shape: f32[1,128], index: 2, kind: input, shape index: {}]   ;;  %s332_s3 = inlined_call_operand.hbm [shape: f32[16,128], index: 3, kind: output, shape index: {}]  }
   0x1   :  { %9 = vsyncpa [#allocation6], 0 }
   0x2   :  { %10 = vsyncpa [#allocation4], 0  ;;  %s15_s14 = sshll.u32 %s329_s0, 4  ;;  %s290_s15 = smov [#allocation2]   ;;  %s16_s14 = int_to_ptr.hbm [resolvable:$true] %s15_s14 }
   0x3   :  { %s17_s16 = sshll.u32 %s290_s15, 4  ;;  %s28_s19 = sshll.u32 %s330_s1, 4  ;;  %s18_s16 = int_to_ptr.vmem [resolvable:$true] %s17_s16  ;;  %s29_s19 = int_to_ptr.hbm [resolvable:$true] %s28_s19 }
   0x4   :  { %s291_s20 = smov 64   ;;  %s292_s21 = smov 4  }
   0x5   :  { %23 = dma.hbm_to_vmem [thread:$0]  %s16_s14, 128, %s18_s16, [#allocation3], %s291_s20, %s291_s20, %s292_s21  }
   0x6   :  { %s293_s22 = smov [#allocation5]  }
   0x7   :  { %s30_s23 = sshll.u32 %s293_s22, 4  ;;  %s31_s23 = int_to_ptr.vmem [resolvable:$true] %s30_s23 }
   0x8   :  { %36 = dma.hbm_to_vmem [thread:$0]  %s29_s19, 1024, %s31_s23, [#allocation6], %s291_s20, %s291_s20, %s292_s21  }
   0x9   :  { %284 = dma.done.wait [#allocation3], 128  }
   0xa   :  { %285 = vsyncadd [#allocation3], 4294967168 }
   0xb   :  { %286 = dma.done.wait [#allocation6], 1024  }
   0xc   :  { %287 = vsyncadd [#allocation6], 4294966272  ;;  %v203_v0 = vld [vmem:[#allocation5 + $0x38] sm:$0xff]  ;;  %v202_v1 = vld [vmem:[#allocation5 + $0x30] sm:$0xff]  ;;  %s294_s24 = smov [#allocation7]   ;;  %s145_s28 = sshll.u32 %s332_s3, 4  ;;  %s146_s28 = int_to_ptr.hbm [resolvable:$true] %s145_s28 }
   0xd   :  { %123 = vmatpush.bf16.msra.mxu0 %v203_v0  ;;  %v201_v2 = vld [vmem:[#allocation5 + $0x28] sm:$0xff]  ;;  %v200_v3 = vld [vmem:[#allocation5 + $0x20] sm:$0xff]  ;;  %v199_v4 = vld [vmem:[#allocation5 + $0x18] sm:$0xff]  ;;  %s143_s25 = sshll.u32 %s294_s24, 4  ;;  %s295_s29 = smov 128   ;;  %s144_s25 = int_to_ptr.vmem [resolvable:$true] %s143_s25 }
   0xe   :  { %v198_v5 = vld [vmem:[#allocation5 + $0x10] sm:$0xff]  ;;  %v197_v6 = vld [vmem:[#allocation5 + $0x8] sm:$0xff]  ;;  %v196_v7 = vld [vmem:[#allocation5] sm:$0xff]  ;;  %s296_s30 = smov 8  }
   0xf   :  { %v195_v8 = vld [vmem:[#allocation2] sm:$0xff] }
  0x10   :  { %v211_v9 = vld [vmem:[%s331_s2] ss:$0 sm:$0xff] }
  0x11   :  { %124 = vmatpush.bf16.msra.mxu0 %v202_v1 }
  0x15   :  { %125 = vmatpush.bf16.msra.mxu0 %v201_v2 }
  0x19   :  { %126 = vmatpush.bf16.msra.mxu0 %v200_v3 }
  0x1d   :  { %127 = vmatpush.bf16.msra.mxu0 %v199_v4 }
  0x21   :  { %128 = vmatpush.bf16.msra.mxu0 %v198_v5 }
  0x25   :  { %129 = vmatpush.bf16.msra.mxu0 %v197_v6 }
  0x29   :  { %130 = vmatpush.bf16.msra.mxu0 %v196_v7 }
  0x2c   :  { %131 = vmatmul.bf16.vlgmr.msra.gmra.mxu0 %v195_v8 }
  0xa9   :  { %v132_v10 = vpop.f32.mrf.mxu0 }
  0xaa   :  { %v133_v11 = vadd.f32 %v211_v9, %v132_v10 }
  0xac   :  { %137 = vst [vmem:[#allocation7] sm:$0xff] %v133_v11 }
  0xb1   :  { %v134_v12 = vpop.f32.mrf.mxu0 }
  0xb2   :  { %v135_v13 = vadd.f32 %v211_v9, %v134_v12 }
  0xb4   :  { %138 = vst [vmem:[#allocation7 + $0x8] sm:$0xff] %v135_v13 }
  0xb5   :  { %151 = dma.vmem_to_hbm [thread:$0]  %s144_s25, 256, %s146_s28, [#allocation4], %s295_s29, %s295_s29, %s296_s30  }
  0xb6   :  { %288 = dma.done.wait [#allocation4], 256  }
  0xb7   :  { %289 = vsyncadd [#allocation4], 4294967040 }
  0xb8   :  { %156 = vsyncpa [#allocation3], 1 }
  0xb9   :  { %157 = vsyncpa [#allocation6], 1 }
  0xba   :  { %158 = vsyncpa [#allocation4], 1 }

</bundles_post_ra>
